<compile_context>
chip_gen: v7x
topology: tpu7x:2x2x1
jax: 0.10.0
libtpu: 0.0.40
codegen_flags: <defaults>
</compile_context>

<pallas_src>
import functools

import jax
import jax.numpy as jnp
from jax.experimental import pallas as pl
from jax.experimental.pallas import tpu as pltpu

_POOL_K = 256  # column-block width for the W-direction pool matmul (MXU K)


def _make_pyramid_kernel(R, W, levels, out_dtype, kb):
    """R = rows of the flattened (B*H, W) slab processed per grid step."""

    def kernel(pw_ref, x_ref, *out_refs):
        prev = x_ref                      # (rows, cols) view for current level
        rows, cols = R, W
        for l in range(1, levels):
            hr, hc = rows // 2, cols // 2
            # H-direction pool: stride-2 sublane loads + one VPU add. Row pairs
            # never cross an image / row-block boundary by construction of R.
            even = prev[pl.ds(0, hr, stride=2), :]
            odd = prev[pl.ds(1, hr, stride=2), :]
            s = even + odd                                    # (hr, cols)
            out = out_refs[l - 1]
            # W-direction pool on the MXU: block-diagonal selection matmul,
            # pw[i, j] = 0.25 iff i // 2 == j (0.25 folds in the 2x2 average).
            hk = kb // 2
            nfull = cols // kb
            for b in range(nfull):
                yb = jnp.dot(s[:, b * kb:(b + 1) * kb], pw_ref[...],
                             preferred_element_type=jnp.float32)
                out[:, b * hk:(b + 1) * hk] = yb.astype(out_dtype)
            rem = cols - nfull * kb
            if rem:
                yb = jnp.dot(s[:, nfull * kb:cols], pw_ref[0:rem, 0:rem // 2],
                             preferred_element_type=jnp.float32)
                out[:, nfull * hk:hc] = yb.astype(out_dtype)
            # Next level reads the block we just wrote (still VMEM resident).
            # TODO(synk): levels with W>>l < 128 store lane-sparse (masked
            # vst); repack tail levels into a lane-dense slab if they dominate.
            prev = out
            rows, cols = hr, hc

    return kernel


def _vmem_capacity_bytes():
    try:
        info_fn = getattr(pltpu, "get_tpu_info", None)
        if info_fn is not None:
            return int(info_fn().vmem_capacity_bytes)
    except Exception:
        pass
    return 128 * 1024 * 1024  # v5e / v6e default


def _choose_row_block(B, H, W, levels, itemsize, budget_bytes, min_steps=8):
    """Rows of the (B*H, W) slab per grid step.

    A block either spans whole images (bt*H rows, bt | B) or is a sub-image
    row tile (Ht | H, Ht % 2**(levels-1) == 0), so pooling never crosses block
    boundaries at any level. Every level's block row count must be
    sublane-aligned for the dtype (or equal the full array extent). Among
    legal blocks, pick the largest that fits the VMEM budget while leaving
    >= min_steps grid steps (pipeline overlap + megacore balance, even step
    counts preferred); otherwise maximize the step count.
    """
    fac = 1 << (levels - 1)
    sub = max(8, 32 // itemsize)           # f32: 8, bf16: 16, int8/fp8: 32
    total_rows = B * H

    def valid(R):
        if R % fac:
            return False
        whole_images = R % H == 0 and B % (R // H) == 0
        sub_image = H % R == 0
        if not (whole_images or sub_image):
            return False
        for l in range(levels):
            br, full = R >> l, total_rows >> l
            if br % sub != 0 and br != full:
                return False
        return True

    cands = {bt * H for bt in range(1, B + 1) if B % bt == 0}
    cands |= {Ht for Ht in range(fac, H, fac) if H % Ht == 0}
    cands = sorted(R for R in cands if valid(R))  # non-empty: R = B*H is valid

    row_bytes = W * itemsize
    within = [R for R in cands if R * row_bytes <= budget_bytes] or [cands[0]]
    good = [R for R in within if total_rows // R >= min_steps]
    if good:
        even = [R for R in good if (total_rows // R) % 2 == 0]
        return max(even or good)
    return min(within)  # maximize pipelining when min_steps is unreachable


@functools.partial(jax.jit, static_argnames=("levels",))
def gaussian_pyramid(x, levels=3):
    """Matches GaussianPyramid.forward: [x, pool(x), pool(pool(x)), ...]."""
    pyramid = [x]
    if levels <= 1:
        return pyramid
    N, C, H, W = x.shape
    factor = 1 << (levels - 1)
    # TODO(synk): PyTorch's avg_pool2d floors odd spatial dims; this kernel
    # requires divisibility by 2**(levels-1) instead.
    assert H % factor == 0 and W % factor == 0, "spatial dims must divide 2**(levels-1)"

    B = N * C
    itemsize = x.dtype.itemsize

    # Generation-aware sizing: v5e/v6e have 128 MiB VMEM per core, v7x 64 MiB.
    vmem_cap = _vmem_capacity_bytes()
    budget = vmem_cap // 16                          # per-step input-tile budget
    vmem_limit = min(64 * 1024 * 1024, vmem_cap // 2)

    R = _choose_row_block(B, H, W, levels, itemsize, budget)
    grid = (B * H // R,)

    # Constant block-diagonal W-pool matrix, built once on the host and kept
    # VMEM resident via a constant index_map: pw[i, j] = 0.25 iff i // 2 == j.
    kb = min(_POOL_K, W)
    ii = jnp.arange(kb, dtype=jnp.int32)[:, None] // 2
    jj = jnp.arange(kb // 2, dtype=jnp.int32)[None, :]
    pw = jnp.where(ii == jj, 0.25, 0.0).astype(x.dtype)

    x2d = x.reshape(B * H, W)
    out_shape = tuple(
        jax.ShapeDtypeStruct((B * (H >> l), W >> l), x.dtype)
        for l in range(1, levels))
    out_specs = tuple(
        pl.BlockSpec((R >> l, W >> l), lambda r: (r, 0)) for l in range(1, levels))

    outs = pl.pallas_call(
        _make_pyramid_kernel(R, W, levels, x.dtype, kb),
        out_shape=out_shape,
        grid=grid,
        in_specs=[
            pl.BlockSpec((kb, kb // 2), lambda r: (0, 0)),   # pw: fetched once
            pl.BlockSpec((R, W), lambda r: (r, 0)),
        ],
        out_specs=out_specs,
        compiler_params=pltpu.CompilerParams(
            dimension_semantics=("parallel",),
            vmem_limit_bytes=vmem_limit,
        ),
    )(pw, x2d)

    for l, out in enumerate(outs, start=1):
        pyramid.append(out.reshape(N, C, H >> l, W >> l))
    return pyramid


def _ref_pool(x):
    N, C, H, W = x.shape
    return x.reshape(N, C, H // 2, 2, W // 2, 2).mean(axis=(3, 5))


if __name__ == "__main__":
    key = jax.random.PRNGKey(0)
    x = jax.random.normal(key, (2, 4, 16, 16), dtype=jnp.float32)

    pyr = gaussian_pyramid(x, levels=3)
    pyr = [jax.block_until_ready(p) for p in pyr]

    # correctness check against pure-JAX reference
    ref = [x]
    cur = x
    for _ in range(1, 3):
        cur = _ref_pool(cur)
        ref.append(cur)

    expected_shapes = [(2, 4, 16, 16), (2, 4, 8, 8), (2, 4, 4, 4)]
    for p, r, s in zip(pyr, ref, expected_shapes):
        assert p.shape == s, (p.shape, s)
        assert p.dtype == x.dtype
        assert jnp.allclose(p, r, atol=1e-5, rtol=1e-5)

    print("KERNEL_OK")
</pallas_src>

<mosaic_0001>
module attributes {stable_mosaic.version = 11 : i64} {
  func.func @kernel(%arg0: i32, %arg1: memref<16x8xf32, #tpu.memory_space<vmem>>, %arg2: memref<32x16xf32, #tpu.memory_space<vmem>>, %arg3: memref<16x8xf32, #tpu.memory_space<vmem>>, %arg4: memref<8x4xf32, #tpu.memory_space<vmem>>) attributes {dimension_semantics = [#tpu.dimension_semantics<parallel>], iteration_bounds = array<i64: 4>, scalar_prefetch = 0 : i64, scratch_operands = 0 : i64, tpu.core_type = #tpu.core_type<tc>, window_params = [{pipeline_mode = #tpu.pipeline_mode<synchronous>, transform_indices = @transform_0, window_bounds = array<i64: 16, 8>}, {transform_indices = @transform_1, window_bounds = array<i64: 32, 16>}, {transform_indices = @transform_2, window_bounds = array<i64: 16, 8>}, {transform_indices = @transform_3, window_bounds = array<i64: 8, 4>}]} {
    %c0 = arith.constant 0 : index
    %c0_0 = arith.constant 0 : index
    %0 = tpu.strided_load %arg2[%c0, %c0_0] {strides = array<i32: 2, 1>} : memref<32x16xf32, #tpu.memory_space<vmem>>, vector<16x16xf32>
    %c1 = arith.constant 1 : index
    %c0_1 = arith.constant 0 : index
    %1 = tpu.strided_load %arg2[%c1, %c0_1] {strides = array<i32: 2, 1>} : memref<32x16xf32, #tpu.memory_space<vmem>>, vector<16x16xf32>
    %2 = arith.addf %0, %1 : vector<16x16xf32>
    %c0_2 = arith.constant 0 : index
    %c0_3 = arith.constant 0 : index
    %3 = vector.load %arg1[%c0_2, %c0_3] : memref<16x8xf32, #tpu.memory_space<vmem>>, vector<16x8xf32>
    %cst = arith.constant dense<0.000000e+00> : vector<16x8xf32>
    %4 = tpu.matmul %2, %3, %cst {dimension_numbers = #tpu.dot_dimension_numbers<[1], [0], [0], [1], [0, 0, 1, 1], [], []>} : vector<16x16xf32>, vector<16x8xf32>, vector<16x8xf32> -> vector<16x8xf32>
    %c0_4 = arith.constant 0 : index
    %c0_5 = arith.constant 0 : index
    %5 = vector.load %arg3[%c0_4, %c0_5] : memref<16x8xf32, #tpu.memory_space<vmem>>, vector<16x8xf32>
    tpu.vector_store %arg3[%c0_4, %c0_5], %4 {strides = array<i32>} : memref<16x8xf32, #tpu.memory_space<vmem>>, vector<16x8xf32>,
    %c0_6 = arith.constant 0 : index
    %c0_7 = arith.constant 0 : index
    %6 = tpu.strided_load %arg3[%c0_6, %c0_7] {strides = array<i32: 2, 1>} : memref<16x8xf32, #tpu.memory_space<vmem>>, vector<8x8xf32>
    %c1_8 = arith.constant 1 : index
    %c0_9 = arith.constant 0 : index
    %7 = tpu.strided_load %arg3[%c1_8, %c0_9] {strides = array<i32: 2, 1>} : memref<16x8xf32, #tpu.memory_space<vmem>>, vector<8x8xf32>
    %8 = arith.addf %6, %7 : vector<8x8xf32>
    %c0_10 = arith.constant 0 : index
    %c0_11 = arith.constant 0 : index
    %9 = vector.load %arg1[%c0_10, %c0_11] : memref<16x8xf32, #tpu.memory_space<vmem>>, vector<8x4xf32>
    %cst_12 = arith.constant dense<0.000000e+00> : vector<8x4xf32>
    %10 = tpu.matmul %8, %9, %cst_12 {dimension_numbers = #tpu.dot_dimension_numbers<[1], [0], [0], [1], [0, 0, 1, 1], [], []>} : vector<8x8xf32>, vector<8x4xf32>, vector<8x4xf32> -> vector<8x4xf32>
    %c0_13 = arith.constant 0 : index
    %c0_14 = arith.constant 0 : index
    %11 = vector.load %arg4[%c0_13, %c0_14] : memref<8x4xf32, #tpu.memory_space<vmem>>, vector<8x4xf32>
    tpu.vector_store %arg4[%c0_13, %c0_14], %10 {strides = array<i32>} : memref<8x4xf32, #tpu.memory_space<vmem>>, vector<8x4xf32>,
    return
  }
  func.func @transform_0(%arg0: i32) -> (i32, i32) {
    %c0_i32 = arith.constant 0 : i32
    %c0_i32_0 = arith.constant 0 : i32
    %c0_i32_1 = arith.constant 0 : i32
    return %c0_i32, %c0_i32_0 : i32, i32
  }
  func.func @transform_1(%arg0: i32) -> (i32, i32) {
    %c0_i32 = arith.constant 0 : i32
    %c0_i32_0 = arith.constant 0 : i32
    return %arg0, %c0_i32 : i32, i32
  }
  func.func @transform_2(%arg0: i32) -> (i32, i32) {
    %c0_i32 = arith.constant 0 : i32
    %c0_i32_0 = arith.constant 0 : i32
    return %arg0, %c0_i32 : i32, i32
  }
  func.func @transform_3(%arg0: i32) -> (i32, i32) {
    %c0_i32 = arith.constant 0 : i32
    %c0_i32_0 = arith.constant 0 : i32
    return %arg0, %c0_i32 : i32, i32
  }
}

</mosaic_0001>

<bundles_post_ra>
// kernel: gaussian_pyramid.1
= control target key start
LH: loop header
LB: loop body
LE: loop exit
PB: predicated region body
PF: predicated region fallthrough
CT: control target
= control target key end

     0   :  { %9 = vsyncpa [#allocation3], 0  ;;  %s1082_s0 = inlined_call_operand.hbm [shape: f32[16,8], index: 0, kind: input, shape index: {}]   ;;  %s1083_s1 = inlined_call_operand.hbm [shape: f32[128,16], index: 1, kind: input, shape index: {}]   ;;  %s1084_s2 = inlined_call_operand.hbm [shape: f32[64,8], index: 2, kind: output, shape index: {0}]   ;;  %s1085_s3 = inlined_call_operand.hbm [shape: f32[32,4], index: 3, kind: output, shape index: {1}]  }
   0x1   :  { %10 = vsyncpa [#allocation6], 0 }
   0x2   :  { %12 = vsyncpa [#allocation6 + $0x1], 0 }
   0x3   :  { %13 = vsyncpa [#allocation4], 0 }
   0x4   :  { %15 = vsyncpa [#allocation4 + $0x1], 0 }
   0x5   :  { %16 = vsyncpa [#allocation9], 0 }
   0x6   :  { %18 = vsyncpa [#allocation9 + $0x1], 0  ;;  %s852_s12 = smov 0   ;;  %s854_s13 = smov 0  }
   0x7   :  { %s856_s14 = smov 0   ;;  %s858_s15 = smov 0  }
   0x8 LB: > { %s873_s16 = sadd.s32 4294967295, %s820_s15   ;;  %s542_s17 = sadd.s32 4294967294, %s820_s15   ;;  %s820_s15 = sphi %s858_s15, %s1104_s15   ;;  %s816_s14 = sphi %s856_s14, %s1103_s14   ;;  %s812_s13 = sphi %s854_s13, %s1102_s13   ;;  %s808_s12 = sphi %s852_s12, %s1101_s12  }
   0x9   : > { %p65_p0 = scmp.ne.s32.totalorder %s812_s13, %s808_s12  ;;  %p1086_p1 = scmp.eq.s32.totalorder %s873_s16, 0 }
   0xa   : > { %p95_p3 = scmp.eq.s32.totalorder %s542_s17, 3  ;;  %p543_p5 = scmp.ge.s32.totalorder %s820_s15, 1 }
   0xb   : > { %p882_p4 = por %p1086_p1, %p65_p0  ;;  %p128_p7 = scmp.lt.s32.totalorder %s820_s15, 5 }
   0xc   : > { %p887_p6 = por %p95_p3, %p65_p0  ;;  %s822_s21 = smov [#allocation2]  }
   0xd   : > { %s1089_s18 = scalar_select %p882_p4, 1, 0 }
   0xe   : > { %s1090_s19 = scalar_select %p887_p6, 1, 0 }
   0xf   : > { %p892_p8 = pnand %p543_p5, %p128_p7  ;;  %s140_s22 = sshll.u32 %s822_s21, 4  ;;  %s141_s22 = int_to_ptr.vmem [resolvable:$true] %s140_s22 }
  0x10   : > { %s905_s24 = sadd.s32 1, %s820_s15   ;;  %s52_s25 = sadd.s32 1, %s816_s14 }
  0x11   : > { %s1091_s20 = scalar_select %p892_p8, 1, 0 }
  0x12   : > { %p602_p9 = pneg %p892_p8  ;;  %s49_s26 = ssub.s32 %s820_s15, %s905_s24 }
  0x13   : > { %s660_s29 = scalar_lea.hbm %s1082_s0, 256 }
  0x14   : > { %p900_p10 = pnand %p602_p9, %p1086_p1  ;;  %p661_p11 = scmp.ne.s32.totalorder %s1082_s0, %s660_s29 }
  0x15   : > { %p667_p3 = scmp.lt.u32.totalorder %s660_s29, %s1082_s0 }
  0x16   : > { %p662_p12 = pneg %p900_p10 }
  0x18   : > { %p663_p13 = pnand %p662_p12, %p661_p11 }
  0x1a   : > { %p664_p0 = pneg %p663_p13 }
  0x1c   : > { %p669_p5 = pnand %p667_p3, %p664_p0 }
  0x1e   : > { %672 = shalt.err (!%p669_p5)
}
  0x1f   : > { %s673_s7 = scalar_lea.vmem %s141_s22, 256  ;;  %p681_p2 = scmp.lt.s32.totalorder %s141_s22, %s141_s22 }
  0x20   : > { %p674_p7 = scmp.ne.s32.totalorder %s141_s22, %s673_s7  ;;  %p682_p6 = scmp.lt.s32.totalorder %s673_s7, %s673_s7 }
  0x22   : > { %p676_p9 = pnand %p674_p7, %p662_p12  ;;  %p683_p4 = por %p682_p6, %p681_p2 }
  0x24   : > { %p677_p1 = pneg %p676_p9 }
  0x26   : > { %p684_p8 = pnand %p683_p4, %p677_p1 }
  0x28   : > { %687 = shalt.err (!%p684_p8)
}
  0x29   : > { %s823_s8 = smov 128   ;;  %s824_s9 = smov 8  }
  0x2a   : > { %605 = dma.hbm_to_vmem [thread:$0]  (!%p900_p10), %s1082_s0, 256, %s141_s22, [#allocation3], %s823_s8, %s823_s8, %s824_s9  }
  0x2b   : > { %p50_p1 = scmp.eq.s32.totalorder %s49_s26, 0  ;;  %p59_p2 = scmp.ne.s32.totalorder %s816_s14, %s812_s13 }
  0x2c   : > { %p60_p4 = scmp.eq.s32.totalorder %s820_s15, 0  ;;  %p618_p6 = scmp.lt.s32.totalorder %s820_s15, 4 }
  0x2d   : > { %s934_s17 = scalar_select %p50_p1, %s816_s14, %s52_s25  }
  0x2e   : > { %p61_p8 = por %p60_p4, %p59_p2  ;;  %p1093_p11 = scmp.eq.s32.totalorder %s873_s16, 3 }
  0x2f   : > { %s154_s23 = sand.u32 1, %s816_s14   ;;  %s568_s27 = sshll.u32 %s820_s15, 9 }
  0x30   : > { %p938_p12 = por %p1093_p11, %p59_p2  ;;  %s546_s28 = sshll.u32 %s154_s23, 5 }
  0x31   : > { %s947_s4 = scalar_lea.hbm %s1083_s1, %s568_s27  ;;  %s158_s22 = scalar_lea.vmem [#allocation5], %s546_s28 }
  0x32   : > { %s165_s25 = sshll.u32 %s158_s22, 4  ;;  %p949_p10 = pnand %p618_p6, %p61_p8  ;;  %s953_s25 = int_to_ptr.vmem [resolvable:$true] %s165_s25 }
  0x33   : > { %s955_s5 = scalar_lea.sflag [#allocation6], %s154_s23  ;;  %s688_s6 = scalar_lea.hbm %s947_s4, 512 }
  0x34   : > { %p689_p13 = scmp.ne.s32.totalorder %s947_s4, %s688_s6  ;;  %p690_p0 = pneg %p949_p10 }
  0x35   : > { %s693_s11 = scalar_lea.hbm %s1083_s1, 2048  ;;  %p694_p7 = scmp.lt.u32.totalorder %s947_s4, %s1083_s1 }
  0x36   : > { %p691_p3 = pnand %p690_p0, %p689_p13  ;;  %p695_p9 = scmp.lt.u32.totalorder %s693_s11, %s688_s6 }
  0x37   : > { %p697_p2 = scmp.lt.u32.totalorder %s688_s6, %s947_s4 }
  0x38   : > { %p692_p5 = pneg %p691_p3  ;;  %p696_p1 = por %p695_p9, %p694_p7 }
  0x3a   : > { %p698_p4 = por %p697_p2, %p696_p1 }
  0x3c   : > { %p699_p6 = pnand %p698_p4, %p692_p5 }
  0x3e   : > { %702 = shalt.err (!%p699_p6)
}
  0x3f   : > { %s703_s23 = scalar_lea.vmem %s953_s25, 512  ;;  %s825_s29 = smov [#allocation5]  }
  0x40   : > { %p704_p8 = scmp.ne.s32.totalorder %s953_s25, %s703_s23  ;;  %s708_s30 = sshll.u32 %s825_s29, 4  ;;  %s709_s30 = int_to_ptr.vmem [resolvable:$false] %s708_s30 }
  0x41   : > { %s710_s22 = scalar_lea.vmem %s709_s30, 1024  ;;  %p711_p3 = scmp.lt.s32.totalorder %s953_s25, %s709_s30 }
  0x42   : > { %p706_p11 = pnand %p704_p8, %p690_p0  ;;  %p712_p7 = scmp.lt.s32.totalorder %s710_s22, %s703_s23 }
  0x44   : > { %p707_p13 = pneg %p706_p11  ;;  %p713_p9 = por %p712_p7, %p711_p3 }
  0x46   : > { %p714_p1 = pnand %p713_p9, %p707_p13 }
  0x48   : > { %717 = shalt.err (!%p714_p1)
}
  0x49   : > { %609 = dma.hbm_to_vmem [thread:$0]  (!%p949_p10), %s947_s4, 512, %s953_s25, %s955_s5, %s823_s8, %s823_s8, %s824_s9  }
  0x4a   : > { %p1096_p0 = scmp.ne.s32.totalorder %s1091_s20, 0 }
  0x4b   : > { %p1097_p5 = scmp.eq.s32.totalorder (!%p1096_p0), %s873_s16, 0 }
  0x4c   : > { %177 = sbr.rel (%p1096_p0) target bundleno = 544 (0x220), region = 28 }
  0x53   : > { %791 = dma.done.wait (%p1097_p5), [#allocation3], 256   ;;  %p1098_p2 = pmov %p1097_p5 }
  0x54   : > { %s993_s6 = sand.u32 1, %s812_s13   ;;  %p1099_p4 = scmp.ne.s32.totalorder %s1089_s18, 0 }
  0x55   : > { %793 = vsyncadd (%p1098_p2), [#allocation3], 4294967040  ;;  %s551_s26 = sshll.u32 %s993_s6, 5  ;;  %s184_s7 = scalar_lea.sflag [#allocation6], %s993_s6 }
  0x56   : > { %s187_s10 = scalar_lea.vmem [#allocation5], %s551_s26 }
  0x57   : > { %795 = dma.done.wait (%p1099_p4), %s184_s7, 512  }
  0x58   : > { %797 = vsyncadd (%p1099_p4), %s184_s7, 4294966784  ;;  %v226_v0 = vld [vmem:[#allocation2] sm:$0xff]  ;;  %v227_v1 = vld [vmem:[#allocation2 + $0x8] sm:$0xff]  ;;  %vm228_vm0 = vcmask 130048   ;;  %v826_v9 = vmov 0.0   ;;  %vm827_vm1 = vmmov 0  }
  0x59   : > { %v217_v2 = vld [vmem:[%s187_s10] ss:$2 sm:$0xff]  ;;  %v588_v3 = vpack.c.bf16 %v227_v1, %v226_v0  ;;  %v555_v4 = vld [vmem:[%s187_s10 + $0x1] ss:$2 sm:$0xff]  ;;  %v554_v5 = vld [vmem:[%s187_s10 + $0x10] ss:$2 sm:$0xff]  ;;  %583 = vmatprep.subr.mxu1 %v826_v9  ;;  %585 = vmatprep.mubr.msk.f32.mxu1 %vm827_vm1, %v826_v9 }
  0x5a   : > { %v556_v6 = vld [vmem:[%s187_s10 + $0x11] ss:$2 sm:$0xff]  ;;  %v224_v7 = vadd.f32 %v555_v4, %v217_v2  ;;  %584 = vmatpush3.msra.mxu1 %v226_v0  ;;  %s552_s18 = sshll.u32 %s993_s6, 4  ;;  %vm310_vm2 = vcmask 64512   ;;  %s569_s8 = sshll.u32 %s873_s16, 8 }
  0x5b   : > { %589 = vmatprep.subr.bf16.mxu0 %v588_v3  ;;  %v225_v8 = vadd.f32 %v556_v6, %v554_v5  ;;  %s207_s20 = scalar_lea.vmem [#allocation7], %s552_s18  ;;  %s1006_s5 = scalar_lea.hbm %s1084_s2, %s569_s8 }
  0x5c   : > { %591 = vmatpush3.bf16.msra.mxu0 %v588_v3  ;;  %580 = vmatprep.mubr.msk.f32.mxu0 %vm228_vm0, %v224_v7  ;;  %s412_s9 = sshll.u32 %s207_s20, 4  ;;  %s394_s11 = scalar_lea.sflag [#allocation4], %s993_s6  ;;  %s1008_s9 = int_to_ptr.vmem [resolvable:$true] %s412_s9 }
  0x5d   : > { %s718_s27 = scalar_lea.vmem %s1008_s9, 256  ;;  %s828_s28 = smov [#allocation7]  }
  0x5e   : > { %p719_p10 = scmp.ne.s32.totalorder %s1008_s9, %s718_s27  ;;  %s722_s23 = sshll.u32 %s828_s28, 4  ;;  %s723_s23 = int_to_ptr.vmem [resolvable:$false] %s722_s23 }
  0x5f   : > { %581 = vmatmul.mubr.msk.f32.vlgmr.msra.gmra.mrb[0].mxu0 %vm228_vm0, %v225_v8  ;;  %s724_s29 = scalar_lea.vmem %s723_s23, 512  ;;  %p725_p11 = scmp.lt.s32.totalorder %s1008_s9, %s723_s23 }
  0x60   : > { %p720_p6 = pnand %p719_p10, %p938_p12  ;;  %p726_p13 = scmp.lt.s32.totalorder %s724_s29, %s718_s27 }
  0x62   : > { %p721_p8 = pneg %p720_p6  ;;  %p727_p3 = por %p726_p13, %p725_p11 }
  0x64   : > { %p728_p7 = pnand %p727_p3, %p721_p8 }
 0x132   : > { %v582_v10 = vpop.f32.mrb[0].mxu0 }
 0x133   : > { %312 = vst.msk [vmem:[%s207_s20 + $0x8] sm:$0xff] %vm310_vm2, %v582_v10  ;;  %v301_v11 = vpop.f32.mrb[1].mxu0 }
 0x134   : > { %311 = vst.msk [vmem:[%s207_s20] sm:$0xff] %vm310_vm2, %v301_v11 }
 0x13b   : > { %v313_v12 = vld [vmem:[%s207_s20] ss:$2 sm:$0xff]  ;;  %v559_v13 = vld [vmem:[%s207_s20 + $0x1] ss:$2 sm:$0xff] }
 0x13c   : > { %v316_v14 = vadd.f32 %v559_v13, %v313_v12 }
 0x13e   : > { %586 = vmatmul.mubr.msk.f32.vlgmr.msra.gmra.mrb[0].mxu1 %vm310_vm2, %v316_v14 }
 0x13f   : > { %731 = shalt.err (!%p728_p7)
}
 0x140   : > { %s732_s30 = scalar_lea.hbm %s1006_s5, 256  ;;  %s736_s7 = scalar_lea.hbm %s1084_s2, 1024 }
 0x141   : > { %p733_p9 = scmp.ne.s32.totalorder %s1006_s5, %s732_s30  ;;  %p737_p5 = scmp.lt.u32.totalorder %s1006_s5, %s1084_s2 }
 0x142   : > { %p738_p2 = scmp.lt.u32.totalorder %s736_s7, %s732_s30  ;;  %p740_p10 = scmp.lt.u32.totalorder %s732_s30, %s1006_s5 }
 0x143   : > { %p734_p1 = pnand %p733_p9, %p938_p12 }
 0x144   : > { %p739_p4 = por %p738_p2, %p737_p5 }
 0x145   : > { %p735_p0 = pneg %p734_p1 }
 0x146   : > { %p741_p6 = por %p740_p10, %p739_p4 }
 0x148   : > { %p742_p8 = pnand %p741_p6, %p735_p0 }
 0x14a   : > { %745 = shalt.err (!%p742_p8)
}
 0x14b   : > { %s829_s20 = smov 128   ;;  %s830_s8 = smov 8   ;;  %vm391_vm3 = vcmask 31744  }
 0x14c   : > { %598 = dma.vmem_to_hbm [thread:$0]  (%p938_p12), %s1008_s9, 256, %s1006_s5, %s394_s11, %s829_s20, %s829_s20, %s830_s8  }
 0x14d   : > { %s553_s4 = sshll.u32 %s993_s6, 3  ;;  %s565_s25 = sshll.u32 %s873_s16, 7 }
 0x14e   : > { %s214_s27 = scalar_lea.vmem [#allocation8], %s553_s4  ;;  %s1039_s30 = scalar_lea.hbm %s1085_s3, %s565_s25 }
 0x14f   : > { %s428_s28 = sshll.u32 %s214_s27, 4  ;;  %s399_s22 = scalar_lea.sflag [#allocation9], %s993_s6  ;;  %s1041_s28 = int_to_ptr.vmem [resolvable:$true] %s428_s28 }
 0x150   : > { %s746_s9 = scalar_lea.vmem %s1041_s28, 128  ;;  %s831_s16 = smov [#allocation8]  }
 0x151   : > { %p747_p11 = scmp.ne.s32.totalorder %s1041_s28, %s746_s9  ;;  %s750_s5 = sshll.u32 %s831_s16, 4  ;;  %s751_s5 = int_to_ptr.vmem [resolvable:$false] %s750_s5 }
 0x152   : > { %s752_s11 = scalar_lea.vmem %s751_s5, 256  ;;  %p753_p7 = scmp.lt.s32.totalorder %s1041_s28, %s751_s5 }
 0x153   : > { %p748_p13 = pnand %p747_p11, %p938_p12  ;;  %p754_p9 = scmp.lt.s32.totalorder %s752_s11, %s746_s9 }
 0x155   : > { %p749_p3 = pneg %p748_p13  ;;  %p755_p1 = por %p754_p9, %p753_p7 }
 0x157   : > { %p756_p0 = pnand %p755_p1, %p749_p3 }
 0x211   : > { %v387_v15 = vpop.f32.mrb[0].mxu1 }
 0x212   : > { %392 = vst.msk [vmem:[%s214_s27] sm:$0xff] %vm391_vm3, %v387_v15  ;;  %v587_v16 = vpop.f32.mrb[1].mxu1 }
 0x213   : > { %759 = shalt.err (!%p756_p0)
}
 0x214   : > { %s760_s6 = scalar_lea.hbm %s1039_s30, 128  ;;  %s764_s10 = scalar_lea.hbm %s1085_s3, 512 }
 0x215   : > { %p761_p5 = scmp.ne.s32.totalorder %s1039_s30, %s760_s6  ;;  %p765_p10 = scmp.lt.u32.totalorder %s1039_s30, %s1085_s3 }
 0x216   : > { %p766_p6 = scmp.lt.u32.totalorder %s764_s10, %s760_s6  ;;  %p768_p11 = scmp.lt.u32.totalorder %s760_s6, %s1039_s30 }
 0x217   : > { %p762_p2 = pnand %p761_p5, %p938_p12 }
 0x218   : > { %p767_p8 = por %p766_p6, %p765_p10 }
 0x219   : > { %p763_p4 = pneg %p762_p2 }
 0x21a   : > { %p769_p13 = por %p768_p11, %p767_p8 }
 0x21c   : > { %p770_p3 = pnand %p769_p13, %p763_p4 }
 0x21e   : > { %773 = shalt.err (!%p770_p3)
}
 0x21f   : > { %599 = dma.vmem_to_hbm [thread:$0]  (%p938_p12), %s1041_s28, 128, %s1039_s30, %s399_s22  }
 0x220 PF: > { %p620_p7 = scmp.ge.s32.totalorder %s820_s15, 2  ;;  %s440_s8 = sand.u32 1, %s808_s12  }
 0x221   : > { %p1100_p9 = scmp.ne.s32.totalorder %s1090_s19, 0  ;;  %s441_s4 = scalar_lea.sflag [#allocation4], %s440_s8 }
 0x223   : > { %p611_p1 = pnand %p620_p7, %p1100_p9 }
 0x225   : > { %799 = dma.done.wait (!%p611_p1), %s441_s4, 256  }
 0x226   : > { %801 = vsyncadd (!%p611_p1), %s441_s4, 4294967040  ;;  %s450_s25 = scalar_lea.sflag [#allocation9], %s440_s8 }
 0x227   : > { %803 = dma.done.wait (!%p611_p1), %s450_s25, 128  }
 0x228   : > { %805 = vsyncadd (!%p611_p1), %s450_s25, 4294967168  ;;  %p21_p12 = scmp.ge.s32.totalorder %s905_s24, 6   ;;  %s1101_s12 = smov %s812_s13 }
 0x229   : > { %s1102_s13 = smov %s816_s14  ;;  %s1103_s14 = smov %s934_s17 }
 0x22a   : > { %s1104_s15 = smov %s905_s24  ;;  %23 = sbr.rel (!%p21_p12) target bundleno = 8 (0x8), region = 99 }
 0x231   :  { %455 = vsyncpa [#allocation3], 1 }
 0x232   :  { %457 = vsyncpa [#allocation3 + $0x1], 1 }
 0x233   :  { %458 = vsyncpa [#allocation6], 1 }
 0x234   :  { %460 = vsyncpa [#allocation6 + $0x1], 1 }
 0x235   :  { %461 = vsyncpa [#allocation4], 1 }
 0x236   :  { %463 = vsyncpa [#allocation4 + $0x1], 1 }
 0x237   :  { %464 = vsyncpa [#allocation9], 1 }
 0x238   :  { %466 = vsyncpa [#allocation9 + $0x1], 1 }

</bundles_post_ra>
